<compile_context>
chip_gen: v7x
topology: tpu7x:2x2x1
jax: 0.10.0
libtpu: 0.0.40
codegen_flags: <defaults>
</compile_context>

<pallas_src>
import math
import functools

import jax
import jax.numpy as jnp
from jax import lax
from jax.experimental import pallas as pl
from jax.experimental.pallas import tpu as pltpu


# ---------------------------------------------------------------------------
# Fused Pallas kernel: whole batch in one invocation (no grid)
# ---------------------------------------------------------------------------

def _cross_attention_kernel(net_ref, ctx_ref, wq_ref, wkv_ref, wo_ref, bo_ref,
                            o_ref, *, batch, tq, tk, num_heads, head_dim):
    latent = num_heads * head_dim
    scale = 1.0 / math.sqrt(head_dim)

    x = net_ref[...]                       # (B*Tq, Dq)
    c = ctx_ref[...]                       # (B*Tk, Dc)

    # Whole-batch projections: one MXU matmul each (softmax scale folded in q).
    q = jnp.dot(x, wq_ref[...], preferred_element_type=jnp.float32) * scale
    kv = jnp.dot(c, wkv_ref[...], preferred_element_type=jnp.float32)
    k = kv[:, :latent]                     # (B*Tk, L)
    v = kv[:, latent:]                     # (B*Tk, L)

    # Per-head lane slices done once over the whole batch (3*H slices total,
    # not per batch item).
    heads = []
    for h in range(num_heads):
        lo, hi = h * head_dim, (h + 1) * head_dim
        heads.append((q[:, lo:hi], k[:, lo:hi], v[:, lo:hi]))

    # Attention per (batch, head); batch selection is sublane-aligned row
    # slicing.  Results are assembled into a single (B*Tq, latent) value so
    # the head merge + output projection is one matmul.
    batch_rows = []
    for b in range(batch):
        q0, q1 = b * tq, (b + 1) * tq
        k0, k1 = b * tk, (b + 1) * tk
        head_cols = []
        for qh, kh, vh in heads:
            qb = qh[q0:q1, :]              # (Tq, Hd)
            kb = kh[k0:k1, :]              # (Tk, Hd)
            vb = vh[k0:k1, :]              # (Tk, Hd)

            # Scores: contract the last dims directly (no k.T relayout).
            s = lax.dot_general(qb, kb, (((1,), (1,)), ((), ())),
                                preferred_element_type=jnp.float32)  # (Tq, Tk)

            # Numerically-stable softmax; normalization applied after PV so it
            # only touches a (Tq, 1) column.
            m = jnp.max(s, axis=-1, keepdims=True)
            p = jnp.exp(s - m)
            inv = pl.reciprocal(jnp.sum(p, axis=-1, keepdims=True), approx=False)
            head_cols.append(
                jnp.dot(p, vb, preferred_element_type=jnp.float32) * inv)
        batch_rows.append(jnp.concatenate(head_cols, axis=-1))       # (Tq, L)
    attn = jnp.concatenate(batch_rows, axis=0)                       # (B*Tq, L)

    # Single output projection over the whole batch + bias, one slab store.
    out = jnp.dot(attn, wo_ref[...], preferred_element_type=jnp.float32)
    o_ref[...] = (out + bo_ref[...]).astype(o_ref.dtype)


# ---------------------------------------------------------------------------
# pallas_call wrapper
# ---------------------------------------------------------------------------

def cross_attention_pallas(net2d, ctx2d, wq, wkv, wo, bo, *, batch, tq, tk,
                           num_heads, head_dim):
    dq = net2d.shape[1]
    kernel = functools.partial(_cross_attention_kernel, batch=batch, tq=tq,
                               tk=tk, num_heads=num_heads, head_dim=head_dim)
    # No grid: everything (inputs, weights, output) is resident in VMEM for a
    # single invocation; at these shapes the full working set is a few tens of
    # KiB, far under even v7x's scoped-VMEM budget.
    return pl.pallas_call(
        kernel,
        out_shape=jax.ShapeDtypeStruct((batch * tq, dq), net2d.dtype),
        compiler_params=pltpu.CompilerParams(vmem_limit_bytes=32 * 1024 * 1024),
    )(net2d, ctx2d, wq, wkv, wo, bo)


def prepare_params(wq, wk, wv, wo, bo):
    """One-time parameter prep: fuse K/V projection weights so the kernel's kv
    projection is a single matmul.  Hoisted off the per-call critical path."""
    return (wq, jnp.concatenate([wk, wv], axis=1), wo, bo)


@functools.partial(jax.jit, static_argnames=("num_heads", "head_dim"))
def cross_attention_forward(net, context, params, *, num_heads, head_dim):
    # net: (B, Tq, query_dim), context: (B, Tk, context_dim)
    wq, wkv, wo, bo = params
    if context is None:                    # self-attention fallback (static)
        context = net
    b, tq, dq = net.shape
    tk, dc = context.shape[1], context.shape[2]
    # Contiguous reshapes (free): present the batch as extra matmul rows so the
    # projections and output store are whole-batch, lane-dense operations.
    out2d = cross_attention_pallas(net.reshape(b * tq, dq),
                                   context.reshape(b * tk, dc),
                                   wq, wkv, wo, bo,
                                   batch=b, tq=tq, tk=tk,
                                   num_heads=num_heads, head_dim=head_dim)
    return out2d.reshape(b, tq, dq)
    # NOTE: at production sizes (latent >= 256, long Tk) this kernel would add
    # a flash-style streamed-KV loop and (on v7x) a grid axis sized to the
    # number of TensorCores, with the KV tile re-derived against v7x's 64 MiB
    # physical / 32 MiB scoped VMEM and bf16 MXU operands on v6e/v7x.


# ---------------------------------------------------------------------------
# Plain-JAX reference (mirrors the PyTorch module in eval mode)
# ---------------------------------------------------------------------------

def reference_forward(net, context, params, *, num_heads):
    wq, wk, wv, wo, bo = params
    b, tq, dq = net.shape
    hd = wq.shape[1] // num_heads

    def split(x):
        bb, t, d = x.shape
        return x.reshape(bb, t, num_heads, hd).transpose(0, 2, 1, 3)

    q = split(net @ wq)
    k = split(context @ wk)
    v = split(context @ wv)
    s = jnp.einsum("bhqd,bhkd->bhqk", q, k) / math.sqrt(hd)
    w = jax.nn.softmax(s, axis=-1)
    o = jnp.einsum("bhqk,bhkd->bhqd", w, v)
    o = o.transpose(0, 2, 1, 3).reshape(b, tq, num_heads * hd)
    return o @ wo + bo


# ---------------------------------------------------------------------------
# main
# ---------------------------------------------------------------------------

if __name__ == "__main__":
    key = jax.random.PRNGKey(0)

    # Module config (query_dim must equal num_heads*head_dim for the original
    # module's final reshape to be consistent).
    num_heads = 4
    head_dim = 8
    latent_dim = num_heads * head_dim      # 32
    query_dim = latent_dim                 # 32
    context_dim = 16

    batch, tq, tk = 2, 16, 8

    kx, kc, k1, k2, k3, k4, k5 = jax.random.split(key, 7)

    net = jax.random.normal(kx, (batch, tq, query_dim), dtype=jnp.float32)
    context = jax.random.normal(kc, (batch, tk, context_dim), dtype=jnp.float32)

    # Deterministic parameter init; weights stored as (in, out) = W^T of torch.
    def init_w(k, fan_in, fan_out):
        bound = 1.0 / math.sqrt(fan_in)
        return jax.random.uniform(k, (fan_in, fan_out), jnp.float32, -bound, bound)

    wq = init_w(k1, query_dim, latent_dim)
    wk = init_w(k2, context_dim, latent_dim)
    wv = init_w(k3, context_dim, latent_dim)
    wo = init_w(k4, latent_dim, query_dim)
    bo = jax.random.uniform(k5, (1, query_dim), jnp.float32,
                            -1.0 / math.sqrt(latent_dim),
                            1.0 / math.sqrt(latent_dim))

    # One-time parameter prep (wk|wv fusion) - off the per-call critical path.
    fused_params = prepare_params(wq, wk, wv, wo, bo)

    out = cross_attention_forward(net, context, fused_params,
                                  num_heads=num_heads, head_dim=head_dim)
    out = jax.block_until_ready(out)

    ref = reference_forward(net, context, (wq, wk, wv, wo, bo),
                            num_heads=num_heads)
    assert out.shape == (batch, tq, query_dim)
    assert jnp.allclose(out, ref, atol=1e-4, rtol=1e-4), "mismatch vs reference"

    print("KERNEL_OK")
</pallas_src>

<mosaic_0001>
module attributes {stable_mosaic.version = 11 : i64} {
  func.func @_cross_attention_kernel(%arg0: memref<32x32xf32, #tpu.memory_space<vmem>>, %arg1: memref<16x16xf32, #tpu.memory_space<vmem>>, %arg2: memref<32x32xf32, #tpu.memory_space<vmem>>, %arg3: memref<16x64xf32, #tpu.memory_space<vmem>>, %arg4: memref<32x32xf32, #tpu.memory_space<vmem>>, %arg5: memref<1x32xf32, #tpu.memory_space<vmem>>, %arg6: memref<32x32xf32, #tpu.memory_space<vmem>>) attributes {dimension_semantics = [], scalar_prefetch = 0 : i64, scratch_operands = 0 : i64, tpu.core_type = #tpu.core_type<tc>} {
    %c0 = arith.constant 0 : index
    %c0_0 = arith.constant 0 : index
    %0 = vector.load %arg0[%c0, %c0_0] : memref<32x32xf32, #tpu.memory_space<vmem>>, vector<32x32xf32>
    %c0_1 = arith.constant 0 : index
    %c0_2 = arith.constant 0 : index
    %1 = vector.load %arg1[%c0_1, %c0_2] : memref<16x16xf32, #tpu.memory_space<vmem>>, vector<16x16xf32>
    %c0_3 = arith.constant 0 : index
    %c0_4 = arith.constant 0 : index
    %2 = vector.load %arg2[%c0_3, %c0_4] : memref<32x32xf32, #tpu.memory_space<vmem>>, vector<32x32xf32>
    %cst = arith.constant dense<0.000000e+00> : vector<32x32xf32>
    %3 = tpu.matmul %0, %2, %cst {dimension_numbers = #tpu.dot_dimension_numbers<[1], [0], [0], [1], [0, 0, 1, 1], [], []>} : vector<32x32xf32>, vector<32x32xf32>, vector<32x32xf32> -> vector<32x32xf32>
    %cst_5 = arith.constant 0.353553385 : f32
    %4 = vector.broadcast %cst_5 : f32 to vector<32x32xf32>
    %5 = arith.mulf %3, %4 : vector<32x32xf32>
    %c0_6 = arith.constant 0 : index
    %c0_7 = arith.constant 0 : index
    %6 = vector.load %arg3[%c0_6, %c0_7] : memref<16x64xf32, #tpu.memory_space<vmem>>, vector<16x64xf32>
    %cst_8 = arith.constant dense<0.000000e+00> : vector<16x64xf32>
    %7 = tpu.matmul %1, %6, %cst_8 {dimension_numbers = #tpu.dot_dimension_numbers<[1], [0], [0], [1], [0, 0, 1, 1], [], []>} : vector<16x16xf32>, vector<16x64xf32>, vector<16x64xf32> -> vector<16x64xf32>
    %8 = vector.extract_strided_slice %7 {offsets = [0, 0], sizes = [16, 32], strides = [1, 1]} : vector<16x64xf32> to vector<16x32xf32>
    %9 = vector.extract_strided_slice %7 {offsets = [0, 32], sizes = [16, 32], strides = [1, 1]} : vector<16x64xf32> to vector<16x32xf32>
    %10 = vector.extract_strided_slice %5 {offsets = [0, 0], sizes = [32, 8], strides = [1, 1]} : vector<32x32xf32> to vector<32x8xf32>
    %11 = vector.extract_strided_slice %8 {offsets = [0, 0], sizes = [16, 8], strides = [1, 1]} : vector<16x32xf32> to vector<16x8xf32>
    %12 = vector.extract_strided_slice %9 {offsets = [0, 0], sizes = [16, 8], strides = [1, 1]} : vector<16x32xf32> to vector<16x8xf32>
    %13 = vector.extract_strided_slice %5 {offsets = [0, 8], sizes = [32, 8], strides = [1, 1]} : vector<32x32xf32> to vector<32x8xf32>
    %14 = vector.extract_strided_slice %8 {offsets = [0, 8], sizes = [16, 8], strides = [1, 1]} : vector<16x32xf32> to vector<16x8xf32>
    %15 = vector.extract_strided_slice %9 {offsets = [0, 8], sizes = [16, 8], strides = [1, 1]} : vector<16x32xf32> to vector<16x8xf32>
    %16 = vector.extract_strided_slice %5 {offsets = [0, 16], sizes = [32, 8], strides = [1, 1]} : vector<32x32xf32> to vector<32x8xf32>
    %17 = vector.extract_strided_slice %8 {offsets = [0, 16], sizes = [16, 8], strides = [1, 1]} : vector<16x32xf32> to vector<16x8xf32>
    %18 = vector.extract_strided_slice %9 {offsets = [0, 16], sizes = [16, 8], strides = [1, 1]} : vector<16x32xf32> to vector<16x8xf32>
    %19 = vector.extract_strided_slice %5 {offsets = [0, 24], sizes = [32, 8], strides = [1, 1]} : vector<32x32xf32> to vector<32x8xf32>
    %20 = vector.extract_strided_slice %8 {offsets = [0, 24], sizes = [16, 8], strides = [1, 1]} : vector<16x32xf32> to vector<16x8xf32>
    %21 = vector.extract_strided_slice %9 {offsets = [0, 24], sizes = [16, 8], strides = [1, 1]} : vector<16x32xf32> to vector<16x8xf32>
    %22 = vector.extract_strided_slice %10 {offsets = [0, 0], sizes = [16, 8], strides = [1, 1]} : vector<32x8xf32> to vector<16x8xf32>
    %23 = vector.extract_strided_slice %11 {offsets = [0, 0], sizes = [8, 8], strides = [1, 1]} : vector<16x8xf32> to vector<8x8xf32>
    %24 = vector.extract_strided_slice %12 {offsets = [0, 0], sizes = [8, 8], strides = [1, 1]} : vector<16x8xf32> to vector<8x8xf32>
    %cst_9 = arith.constant dense<0.000000e+00> : vector<16x8xf32>
    %25 = tpu.matmul %22, %23, %cst_9 {dimension_numbers = #tpu.dot_dimension_numbers<[1], [1], [0], [0], [0, 0, 1, 0], [], []>} : vector<16x8xf32>, vector<8x8xf32>, vector<16x8xf32> -> vector<16x8xf32>
    %cst_10 = arith.constant dense<0xFF800000> : vector<16xf32>
    %26 = vector.multi_reduction <maximumf>, %25, %cst_10 [1] : vector<16x8xf32> to vector<16xf32>
    %27 = vector.shape_cast %26 : vector<16xf32> to vector<16x1xf32>
    %28 = vector.broadcast %27 : vector<16x1xf32> to vector<16x8xf32>
    %29 = arith.subf %25, %28 : vector<16x8xf32>
    %30 = math.exp %29 : vector<16x8xf32>
    %cst_11 = arith.constant dense<0.000000e+00> : vector<16xf32>
    %31 = vector.multi_reduction <add>, %30, %cst_11 [1] : vector<16x8xf32> to vector<16xf32>
    %32 = vector.shape_cast %31 : vector<16xf32> to vector<16x1xf32>
    %33 = tpu.reciprocal %32 : vector<16x1xf32> -> vector<16x1xf32>
    %cst_12 = arith.constant dense<0.000000e+00> : vector<16x8xf32>
    %34 = tpu.matmul %30, %24, %cst_12 {dimension_numbers = #tpu.dot_dimension_numbers<[1], [0], [0], [1], [0, 0, 1, 1], [], []>} : vector<16x8xf32>, vector<8x8xf32>, vector<16x8xf32> -> vector<16x8xf32>
    %35 = vector.broadcast %33 : vector<16x1xf32> to vector<16x8xf32>
    %36 = arith.mulf %34, %35 : vector<16x8xf32>
    %37 = vector.extract_strided_slice %13 {offsets = [0, 0], sizes = [16, 8], strides = [1, 1]} : vector<32x8xf32> to vector<16x8xf32>
    %38 = vector.extract_strided_slice %14 {offsets = [0, 0], sizes = [8, 8], strides = [1, 1]} : vector<16x8xf32> to vector<8x8xf32>
    %39 = vector.extract_strided_slice %15 {offsets = [0, 0], sizes = [8, 8], strides = [1, 1]} : vector<16x8xf32> to vector<8x8xf32>
    %cst_13 = arith.constant dense<0.000000e+00> : vector<16x8xf32>
    %40 = tpu.matmul %37, %38, %cst_13 {dimension_numbers = #tpu.dot_dimension_numbers<[1], [1], [0], [0], [0, 0, 1, 0], [], []>} : vector<16x8xf32>, vector<8x8xf32>, vector<16x8xf32> -> vector<16x8xf32>
    %cst_14 = arith.constant dense<0xFF800000> : vector<16xf32>
    %41 = vector.multi_reduction <maximumf>, %40, %cst_14 [1] : vector<16x8xf32> to vector<16xf32>
    %42 = vector.shape_cast %41 : vector<16xf32> to vector<16x1xf32>
    %43 = vector.broadcast %42 : vector<16x1xf32> to vector<16x8xf32>
    %44 = arith.subf %40, %43 : vector<16x8xf32>
    %45 = math.exp %44 : vector<16x8xf32>
    %cst_15 = arith.constant dense<0.000000e+00> : vector<16xf32>
    %46 = vector.multi_reduction <add>, %45, %cst_15 [1] : vector<16x8xf32> to vector<16xf32>
    %47 = vector.shape_cast %46 : vector<16xf32> to vector<16x1xf32>
    %48 = tpu.reciprocal %47 : vector<16x1xf32> -> vector<16x1xf32>
    %cst_16 = arith.constant dense<0.000000e+00> : vector<16x8xf32>
    %49 = tpu.matmul %45, %39, %cst_16 {dimension_numbers = #tpu.dot_dimension_numbers<[1], [0], [0], [1], [0, 0, 1, 1], [], []>} : vector<16x8xf32>, vector<8x8xf32>, vector<16x8xf32> -> vector<16x8xf32>
    %50 = vector.broadcast %48 : vector<16x1xf32> to vector<16x8xf32>
    %51 = arith.mulf %49, %50 : vector<16x8xf32>
    %52 = vector.extract_strided_slice %16 {offsets = [0, 0], sizes = [16, 8], strides = [1, 1]} : vector<32x8xf32> to vector<16x8xf32>
    %53 = vector.extract_strided_slice %17 {offsets = [0, 0], sizes = [8, 8], strides = [1, 1]} : vector<16x8xf32> to vector<8x8xf32>
    %54 = vector.extract_strided_slice %18 {offsets = [0, 0], sizes = [8, 8], strides = [1, 1]} : vector<16x8xf32> to vector<8x8xf32>
    %cst_17 = arith.constant dense<0.000000e+00> : vector<16x8xf32>
    %55 = tpu.matmul %52, %53, %cst_17 {dimension_numbers = #tpu.dot_dimension_numbers<[1], [1], [0], [0], [0, 0, 1, 0], [], []>} : vector<16x8xf32>, vector<8x8xf32>, vector<16x8xf32> -> vector<16x8xf32>
    %cst_18 = arith.constant dense<0xFF800000> : vector<16xf32>
    %56 = vector.multi_reduction <maximumf>, %55, %cst_18 [1] : vector<16x8xf32> to vector<16xf32>
    %57 = vector.shape_cast %56 : vector<16xf32> to vector<16x1xf32>
    %58 = vector.broadcast %57 : vector<16x1xf32> to vector<16x8xf32>
    %59 = arith.subf %55, %58 : vector<16x8xf32>
    %60 = math.exp %59 : vector<16x8xf32>
    %cst_19 = arith.constant dense<0.000000e+00> : vector<16xf32>
    %61 = vector.multi_reduction <add>, %60, %cst_19 [1] : vector<16x8xf32> to vector<16xf32>
    %62 = vector.shape_cast %61 : vector<16xf32> to vector<16x1xf32>
    %63 = tpu.reciprocal %62 : vector<16x1xf32> -> vector<16x1xf32>
    %cst_20 = arith.constant dense<0.000000e+00> : vector<16x8xf32>
    %64 = tpu.matmul %60, %54, %cst_20 {dimension_numbers = #tpu.dot_dimension_numbers<[1], [0], [0], [1], [0, 0, 1, 1], [], []>} : vector<16x8xf32>, vector<8x8xf32>, vector<16x8xf32> -> vector<16x8xf32>
    %65 = vector.broadcast %63 : vector<16x1xf32> to vector<16x8xf32>
    %66 = arith.mulf %64, %65 : vector<16x8xf32>
    %67 = vector.extract_strided_slice %19 {offsets = [0, 0], sizes = [16, 8], strides = [1, 1]} : vector<32x8xf32> to vector<16x8xf32>
    %68 = vector.extract_strided_slice %20 {offsets = [0, 0], sizes = [8, 8], strides = [1, 1]} : vector<16x8xf32> to vector<8x8xf32>
    %69 = vector.extract_strided_slice %21 {offsets = [0, 0], sizes = [8, 8], strides = [1, 1]} : vector<16x8xf32> to vector<8x8xf32>
    %cst_21 = arith.constant dense<0.000000e+00> : vector<16x8xf32>
    %70 = tpu.matmul %67, %68, %cst_21 {dimension_numbers = #tpu.dot_dimension_numbers<[1], [1], [0], [0], [0, 0, 1, 0], [], []>} : vector<16x8xf32>, vector<8x8xf32>, vector<16x8xf32> -> vector<16x8xf32>
    %cst_22 = arith.constant dense<0xFF800000> : vector<16xf32>
    %71 = vector.multi_reduction <maximumf>, %70, %cst_22 [1] : vector<16x8xf32> to vector<16xf32>
    %72 = vector.shape_cast %71 : vector<16xf32> to vector<16x1xf32>
    %73 = vector.broadcast %72 : vector<16x1xf32> to vector<16x8xf32>
    %74 = arith.subf %70, %73 : vector<16x8xf32>
    %75 = math.exp %74 : vector<16x8xf32>
    %cst_23 = arith.constant dense<0.000000e+00> : vector<16xf32>
    %76 = vector.multi_reduction <add>, %75, %cst_23 [1] : vector<16x8xf32> to vector<16xf32>
    %77 = vector.shape_cast %76 : vector<16xf32> to vector<16x1xf32>
    %78 = tpu.reciprocal %77 : vector<16x1xf32> -> vector<16x1xf32>
    %cst_24 = arith.constant dense<0.000000e+00> : vector<16x8xf32>
    %79 = tpu.matmul %75, %69, %cst_24 {dimension_numbers = #tpu.dot_dimension_numbers<[1], [0], [0], [1], [0, 0, 1, 1], [], []>} : vector<16x8xf32>, vector<8x8xf32>, vector<16x8xf32> -> vector<16x8xf32>
    %80 = vector.broadcast %78 : vector<16x1xf32> to vector<16x8xf32>
    %81 = arith.mulf %79, %80 : vector<16x8xf32>
    %82 = tpu.concatenate %36, %51, %66, %81 in 1 : vector<16x8xf32>, vector<16x8xf32>, vector<16x8xf32>, vector<16x8xf32> -> vector<16x32xf32>
    %83 = vector.extract_strided_slice %10 {offsets = [16, 0], sizes = [16, 8], strides = [1, 1]} : vector<32x8xf32> to vector<16x8xf32>
    %84 = vector.extract_strided_slice %11 {offsets = [8, 0], sizes = [8, 8], strides = [1, 1]} : vector<16x8xf32> to vector<8x8xf32>
    %85 = vector.extract_strided_slice %12 {offsets = [8, 0], sizes = [8, 8], strides = [1, 1]} : vector<16x8xf32> to vector<8x8xf32>
    %cst_25 = arith.constant dense<0.000000e+00> : vector<16x8xf32>
    %86 = tpu.matmul %83, %84, %cst_25 {dimension_numbers = #tpu.dot_dimension_numbers<[1], [1], [0], [0], [0, 0, 1, 0], [], []>} : vector<16x8xf32>, vector<8x8xf32>, vector<16x8xf32> -> vector<16x8xf32>
    %cst_26 = arith.constant dense<0xFF800000> : vector<16xf32>
    %87 = vector.multi_reduction <maximumf>, %86, %cst_26 [1] : vector<16x8xf32> to vector<16xf32>
    %88 = vector.shape_cast %87 : vector<16xf32> to vector<16x1xf32>
    %89 = vector.broadcast %88 : vector<16x1xf32> to vector<16x8xf32>
    %90 = arith.subf %86, %89 : vector<16x8xf32>
    %91 = math.exp %90 : vector<16x8xf32>
    %cst_27 = arith.constant dense<0.000000e+00> : vector<16xf32>
    %92 = vector.multi_reduction <add>, %91, %cst_27 [1] : vector<16x8xf32> to vector<16xf32>
    %93 = vector.shape_cast %92 : vector<16xf32> to vector<16x1xf32>
    %94 = tpu.reciprocal %93 : vector<16x1xf32> -> vector<16x1xf32>
    %cst_28 = arith.constant dense<0.000000e+00> : vector<16x8xf32>
    %95 = tpu.matmul %91, %85, %cst_28 {dimension_numbers = #tpu.dot_dimension_numbers<[1], [0], [0], [1], [0, 0, 1, 1], [], []>} : vector<16x8xf32>, vector<8x8xf32>, vector<16x8xf32> -> vector<16x8xf32>
    %96 = vector.broadcast %94 : vector<16x1xf32> to vector<16x8xf32>
    %97 = arith.mulf %95, %96 : vector<16x8xf32>
    %98 = vector.extract_strided_slice %13 {offsets = [16, 0], sizes = [16, 8], strides = [1, 1]} : vector<32x8xf32> to vector<16x8xf32>
    %99 = vector.extract_strided_slice %14 {offsets = [8, 0], sizes = [8, 8], strides = [1, 1]} : vector<16x8xf32> to vector<8x8xf32>
    %100 = vector.extract_strided_slice %15 {offsets = [8, 0], sizes = [8, 8], strides = [1, 1]} : vector<16x8xf32> to vector<8x8xf32>
    %cst_29 = arith.constant dense<0.000000e+00> : vector<16x8xf32>
    %101 = tpu.matmul %98, %99, %cst_29 {dimension_numbers = #tpu.dot_dimension_numbers<[1], [1], [0], [0], [0, 0, 1, 0], [], []>} : vector<16x8xf32>, vector<8x8xf32>, vector<16x8xf32> -> vector<16x8xf32>
    %cst_30 = arith.constant dense<0xFF800000> : vector<16xf32>
    %102 = vector.multi_reduction <maximumf>, %101, %cst_30 [1] : vector<16x8xf32> to vector<16xf32>
    %103 = vector.shape_cast %102 : vector<16xf32> to vector<16x1xf32>
    %104 = vector.broadcast %103 : vector<16x1xf32> to vector<16x8xf32>
    %105 = arith.subf %101, %104 : vector<16x8xf32>
    %106 = math.exp %105 : vector<16x8xf32>
    %cst_31 = arith.constant dense<0.000000e+00> : vector<16xf32>
    %107 = vector.multi_reduction <add>, %106, %cst_31 [1] : vector<16x8xf32> to vector<16xf32>
    %108 = vector.shape_cast %107 : vector<16xf32> to vector<16x1xf32>
    %109 = tpu.reciprocal %108 : vector<16x1xf32> -> vector<16x1xf32>
    %cst_32 = arith.constant dense<0.000000e+00> : vector<16x8xf32>
    %110 = tpu.matmul %106, %100, %cst_32 {dimension_numbers = #tpu.dot_dimension_numbers<[1], [0], [0], [1], [0, 0, 1, 1], [], []>} : vector<16x8xf32>, vector<8x8xf32>, vector<16x8xf32> -> vector<16x8xf32>
    %111 = vector.broadcast %109 : vector<16x1xf32> to vector<16x8xf32>
    %112 = arith.mulf %110, %111 : vector<16x8xf32>
    %113 = vector.extract_strided_slice %16 {offsets = [16, 0], sizes = [16, 8], strides = [1, 1]} : vector<32x8xf32> to vector<16x8xf32>
    %114 = vector.extract_strided_slice %17 {offsets = [8, 0], sizes = [8, 8], strides = [1, 1]} : vector<16x8xf32> to vector<8x8xf32>
    %115 = vector.extract_strided_slice %18 {offsets = [8, 0], sizes = [8, 8], strides = [1, 1]} : vector<16x8xf32> to vector<8x8xf32>
    %cst_33 = arith.constant dense<0.000000e+00> : vector<16x8xf32>
    %116 = tpu.matmul %113, %114, %cst_33 {dimension_numbers = #tpu.dot_dimension_numbers<[1], [1], [0], [0], [0, 0, 1, 0], [], []>} : vector<16x8xf32>, vector<8x8xf32>, vector<16x8xf32> -> vector<16x8xf32>
    %cst_34 = arith.constant dense<0xFF800000> : vector<16xf32>
    %117 = vector.multi_reduction <maximumf>, %116, %cst_34 [1] : vector<16x8xf32> to vector<16xf32>
    %118 = vector.shape_cast %117 : vector<16xf32> to vector<16x1xf32>
    %119 = vector.broadcast %118 : vector<16x1xf32> to vector<16x8xf32>
    %120 = arith.subf %116, %119 : vector<16x8xf32>
    %121 = math.exp %120 : vector<16x8xf32>
    %cst_35 = arith.constant dense<0.000000e+00> : vector<16xf32>
    %122 = vector.multi_reduction <add>, %121, %cst_35 [1] : vector<16x8xf32> to vector<16xf32>
    %123 = vector.shape_cast %122 : vector<16xf32> to vector<16x1xf32>
    %124 = tpu.reciprocal %123 : vector<16x1xf32> -> vector<16x1xf32>
    %cst_36 = arith.constant dense<0.000000e+00> : vector<16x8xf32>
    %125 = tpu.matmul %121, %115, %cst_36 {dimension_numbers = #tpu.dot_dimension_numbers<[1], [0], [0], [1], [0, 0, 1, 1], [], []>} : vector<16x8xf32>, vector<8x8xf32>, vector<16x8xf32> -> vector<16x8xf32>
    %126 = vector.broadcast %124 : vector<16x1xf32> to vector<16x8xf32>
    %127 = arith.mulf %125, %126 : vector<16x8xf32>
    %128 = vector.extract_strided_slice %19 {offsets = [16, 0], sizes = [16, 8], strides = [1, 1]} : vector<32x8xf32> to vector<16x8xf32>
    %129 = vector.extract_strided_slice %20 {offsets = [8, 0], sizes = [8, 8], strides = [1, 1]} : vector<16x8xf32> to vector<8x8xf32>
    %130 = vector.extract_strided_slice %21 {offsets = [8, 0], sizes = [8, 8], strides = [1, 1]} : vector<16x8xf32> to vector<8x8xf32>
    %cst_37 = arith.constant dense<0.000000e+00> : vector<16x8xf32>
    %131 = tpu.matmul %128, %129, %cst_37 {dimension_numbers = #tpu.dot_dimension_numbers<[1], [1], [0], [0], [0, 0, 1, 0], [], []>} : vector<16x8xf32>, vector<8x8xf32>, vector<16x8xf32> -> vector<16x8xf32>
    %cst_38 = arith.constant dense<0xFF800000> : vector<16xf32>
    %132 = vector.multi_reduction <maximumf>, %131, %cst_38 [1] : vector<16x8xf32> to vector<16xf32>
    %133 = vector.shape_cast %132 : vector<16xf32> to vector<16x1xf32>
    %134 = vector.broadcast %133 : vector<16x1xf32> to vector<16x8xf32>
    %135 = arith.subf %131, %134 : vector<16x8xf32>
    %136 = math.exp %135 : vector<16x8xf32>
    %cst_39 = arith.constant dense<0.000000e+00> : vector<16xf32>
    %137 = vector.multi_reduction <add>, %136, %cst_39 [1] : vector<16x8xf32> to vector<16xf32>
    %138 = vector.shape_cast %137 : vector<16xf32> to vector<16x1xf32>
    %139 = tpu.reciprocal %138 : vector<16x1xf32> -> vector<16x1xf32>
    %cst_40 = arith.constant dense<0.000000e+00> : vector<16x8xf32>
    %140 = tpu.matmul %136, %130, %cst_40 {dimension_numbers = #tpu.dot_dimension_numbers<[1], [0], [0], [1], [0, 0, 1, 1], [], []>} : vector<16x8xf32>, vector<8x8xf32>, vector<16x8xf32> -> vector<16x8xf32>
    %141 = vector.broadcast %139 : vector<16x1xf32> to vector<16x8xf32>
    %142 = arith.mulf %140, %141 : vector<16x8xf32>
    %143 = tpu.concatenate %97, %112, %127, %142 in 1 : vector<16x8xf32>, vector<16x8xf32>, vector<16x8xf32>, vector<16x8xf32> -> vector<16x32xf32>
    %144 = tpu.concatenate %82, %143 in 0 : vector<16x32xf32>, vector<16x32xf32> -> vector<32x32xf32>
    %c0_41 = arith.constant 0 : index
    %c0_42 = arith.constant 0 : index
    %145 = vector.load %arg4[%c0_41, %c0_42] : memref<32x32xf32, #tpu.memory_space<vmem>>, vector<32x32xf32>
    %cst_43 = arith.constant dense<0.000000e+00> : vector<32x32xf32>
    %146 = tpu.matmul %144, %145, %cst_43 {dimension_numbers = #tpu.dot_dimension_numbers<[1], [0], [0], [1], [0, 0, 1, 1], [], []>} : vector<32x32xf32>, vector<32x32xf32>, vector<32x32xf32> -> vector<32x32xf32>
    %c0_44 = arith.constant 0 : index
    %c0_45 = arith.constant 0 : index
    %147 = vector.load %arg5[%c0_44, %c0_45] : memref<1x32xf32, #tpu.memory_space<vmem>>, vector<1x32xf32>
    %148 = vector.broadcast %147 : vector<1x32xf32> to vector<32x32xf32>
    %149 = arith.addf %146, %148 : vector<32x32xf32>
    %c0_46 = arith.constant 0 : index
    %c0_47 = arith.constant 0 : index
    %150 = vector.load %arg6[%c0_46, %c0_47] : memref<32x32xf32, #tpu.memory_space<vmem>>, vector<32x32xf32>
    tpu.vector_store %arg6[%c0_46, %c0_47], %149 {strides = array<i32>} : memref<32x32xf32, #tpu.memory_space<vmem>>, vector<32x32xf32>,
    return
  }
}

</mosaic_0001>

<bundles_post_ra>
// kernel: cross_attention_forward.1
= control target key start
LH: loop header
LB: loop body
LE: loop exit
PB: predicated region body
PF: predicated region fallthrough
CT: control target
= control target key end

     0   :  { %11 = vsyncpa [#allocation3], 0  ;;  %s2836_s0 = inlined_call_operand.hbm [shape: f32[32,32], index: 0, kind: input, shape index: {}]   ;;  %s2837_s1 = inlined_call_operand.hbm [shape: f32[16,16], index: 1, kind: input, shape index: {}]   ;;  %s2838_s2 = inlined_call_operand.hbm [shape: f32[32,32], index: 2, kind: input, shape index: {}]   ;;  %s2839_s3 = inlined_call_operand.vmem [shape: f32[16,64], index: 3, kind: input, shape index: {}]   ;;  %s2840_s4 = inlined_call_operand.hbm [shape: f32[32,32], index: 4, kind: input, shape index: {}]   ;;  %s2841_s5 = inlined_call_operand.vmem [shape: f32[1,32], index: 5, kind: input, shape index: {}]   ;;  %s2842_s6 = inlined_call_operand.hbm [shape: f32[32,32], index: 6, kind: output, shape index: {}]  }
   0x1   :  { %12 = vsyncpa [#allocation6], 0 }
   0x2   :  { %13 = vsyncpa [#allocation9], 0 }
   0x3   :  { %14 = vsyncpa [#allocation4], 0  ;;  %s2462_s21 = smov [#allocation5]   ;;  %s2463_s23 = smov [#allocation2]  }
   0x4   :  { %s32_s22 = sshll.u32 %s2462_s21, 4  ;;  %s20_s24 = sshll.u32 %s2463_s23, 4  ;;  %s33_s22 = int_to_ptr.vmem [resolvable:$true] %s32_s22  ;;  %s2513_s24 = int_to_ptr.vmem [resolvable:$true] %s20_s24 }
   0x5   :  { %s2344_s27 = scalar_lea.hbm %s2837_s1, 256 }
   0x6   :  { %p2345_p0 = scmp.ne.s32.totalorder %s2837_s1, %s2344_s27  ;;  %p2348_p1 = scmp.lt.u32.totalorder %s2344_s27, %s2837_s1 }
   0x8   :  { %p2350_p2 = pnand %p2348_p1, %p2345_p0 }
   0xa   :  { %2353 = shalt.err (!%p2350_p2)
}
   0xb   :  { %s2354_s8 = scalar_lea.vmem %s33_s22, 256  ;;  %p2359_p4 = scmp.lt.s32.totalorder %s33_s22, %s33_s22 }
   0xc   :  { %p2355_p3 = scmp.ne.s32.totalorder %s33_s22, %s2354_s8  ;;  %p2360_p5 = scmp.lt.s32.totalorder %s2354_s8, %s2354_s8 }
   0xe   :  { %p2361_p6 = por %p2360_p5, %p2359_p4 }
  0x10   :  { %p2362_p7 = pnand %p2361_p6, %p2355_p3 }
  0x12   :  { %2365 = shalt.err (!%p2362_p7)
}
  0x13   :  { %s2464_s9 = smov 128   ;;  %s2465_s10 = smov 8  }
  0x14   :  { %38 = dma.hbm_to_vmem [thread:$0]  %s2837_s1, 256, %s33_s22, [#allocation6], %s2464_s9, %s2464_s9, %s2465_s10  }
  0x15   :  { %s2366_s15 = scalar_lea.hbm %s2836_s0, 512 }
  0x16   :  { %p2367_p8 = scmp.ne.s32.totalorder %s2836_s0, %s2366_s15  ;;  %p2370_p9 = scmp.lt.u32.totalorder %s2366_s15, %s2836_s0 }
  0x18   :  { %p2372_p10 = pnand %p2370_p9, %p2367_p8 }
  0x1a   :  { %2375 = shalt.err (!%p2372_p10)
}
  0x1b   :  { %s2376_s20 = scalar_lea.vmem %s2513_s24, 512  ;;  %p2381_p12 = scmp.lt.s32.totalorder %s2513_s24, %s2513_s24 }
  0x1c   :  { %p2377_p11 = scmp.ne.s32.totalorder %s2513_s24, %s2376_s20  ;;  %p2382_p13 = scmp.lt.s32.totalorder %s2376_s20, %s2376_s20 }
  0x1e   :  { %p2383_p0 = por %p2382_p13, %p2381_p12 }
  0x20   :  { %p2384_p1 = pnand %p2383_p0, %p2377_p11 }
  0x22   :  { %2387 = shalt.err (!%p2384_p1)
}
  0x23   :  { %26 = dma.hbm_to_vmem [thread:$0]  %s2836_s0, 512, %s2513_s24, [#allocation3], %s2464_s9, %s2464_s9, %s2465_s10  }
  0x24   :  { %s2466_s22 = smov [#allocation7]   ;;  %s2467_s25 = smov [#allocation8]  }
  0x25   :  { %s44_s23 = sshll.u32 %s2466_s22, 4  ;;  %s58_s26 = sshll.u32 %s2467_s25, 4  ;;  %s45_s23 = int_to_ptr.vmem [resolvable:$true] %s44_s23  ;;  %s2550_s26 = int_to_ptr.vmem [resolvable:$true] %s58_s26 }
  0x26   :  { %s2388_s29 = scalar_lea.hbm %s2838_s2, 512 }
  0x27   :  { %p2389_p2 = scmp.ne.s32.totalorder %s2838_s2, %s2388_s29  ;;  %p2392_p3 = scmp.lt.u32.totalorder %s2388_s29, %s2838_s2 }
  0x29   :  { %p2394_p4 = pnand %p2392_p3, %p2389_p2 }
  0x2b   :  { %2397 = shalt.err (!%p2394_p4)
}
  0x2c   :  { %s2398_s0 = scalar_lea.vmem %s45_s23, 512  ;;  %p2403_p6 = scmp.lt.s32.totalorder %s45_s23, %s45_s23 }
  0x2d   :  { %p2399_p5 = scmp.ne.s32.totalorder %s45_s23, %s2398_s0  ;;  %p2404_p7 = scmp.lt.s32.totalorder %s2398_s0, %s2398_s0 }
  0x2f   :  { %p2405_p8 = por %p2404_p7, %p2403_p6 }
  0x31   :  { %p2406_p9 = pnand %p2405_p8, %p2399_p5 }
  0x33   :  { %2409 = shalt.err (!%p2406_p9)
}
  0x34   :  { %50 = dma.hbm_to_vmem [thread:$0]  %s2838_s2, 512, %s45_s23, [#allocation6], %s2464_s9, %s2464_s9, %s2465_s10  }
  0x35   :  { %s2410_s15 = scalar_lea.hbm %s2840_s4, 512 }
  0x36   :  { %p2411_p10 = scmp.ne.s32.totalorder %s2840_s4, %s2410_s15  ;;  %p2414_p11 = scmp.lt.u32.totalorder %s2410_s15, %s2840_s4 }
  0x38   :  { %p2416_p12 = pnand %p2414_p11, %p2411_p10 }
  0x3a   :  { %2419 = shalt.err (!%p2416_p12)
}
  0x3b   :  { %s2420_s20 = scalar_lea.vmem %s2550_s26, 512  ;;  %p2425_p0 = scmp.lt.s32.totalorder %s2550_s26, %s2550_s26 }
  0x3c   :  { %p2421_p13 = scmp.ne.s32.totalorder %s2550_s26, %s2420_s20  ;;  %p2426_p1 = scmp.lt.s32.totalorder %s2420_s20, %s2420_s20 }
  0x3e   :  { %p2427_p2 = por %p2426_p1, %p2425_p0 }
  0x40   :  { %p2428_p3 = pnand %p2427_p2, %p2421_p13 }
  0x42   :  { %2431 = shalt.err (!%p2428_p3)
}
  0x43   :  { %64 = dma.hbm_to_vmem [thread:$0]  %s2840_s4, 512, %s2550_s26, [#allocation9], %s2464_s9, %s2464_s9, %s2465_s10  }
  0x44   :  { %2454 = dma.done.wait [#allocation3], 512  }
  0x45   :  { %2455 = vsyncadd [#allocation3], 4294966784 }
  0x46   :  { %2456 = dma.done.wait [#allocation6], 768  }
  0x47   :  { %2457 = vsyncadd [#allocation6], 4294966528 }
  0x48   :  { %2458 = dma.done.wait [#allocation9], 512  }
  0x49   :  { %2459 = vsyncadd [#allocation9], 4294966784  ;;  %vm89_vm0 = vcmask 261120   ;;  %v85_v0 = vld [vmem:[#allocation7] sm:$0xff]  ;;  %v86_v1 = vld [vmem:[#allocation7 + $0x8] sm:$0xff]  ;;  %vm193_vm1 = vcmask 130048  }
  0x4a   :  { %v87_v2 = vld [vmem:[#allocation7 + $0x10] sm:$0xff]  ;;  %v2240_v3 = vpack.c.bf16 %v86_v1, %v85_v0  ;;  %v88_v4 = vld [vmem:[#allocation7 + $0x18] sm:$0xff]  ;;  %v81_v6 = vld [vmem:[#allocation2 + $0x10] sm:$0xff]  ;;  %vm275_vm2 = vcmask 64512   ;;  %s2469_s25 = smov 112   ;;  %s2470_s26 = smov 104  }
  0x4b   :  { %v79_v5 = vld [vmem:[#allocation2] sm:$0xff]  ;;  %v2244_v7 = vpack.c.bf16 %v88_v4, %v87_v2  ;;  %2136 = vmatprep.mubr.msk.f32.mxu1 %vm89_vm0, %v81_v6  ;;  %v192_v9 = vld [vmem:[%s2839_s3 + $0x8] sm:$0xff]  ;;  %v82_v12 = vld [vmem:[#allocation2 + $0x18] sm:$0xff]  ;;  %s2471_s27 = smov 96   ;;  %s2472_s28 = smov 88   ;;  %vm1073_vm3 = vcmask 195584  }
  0x4c   :  { %2133 = vmatprep.mubr.msk.f32.mxu0 %vm89_vm0, %v79_v5  ;;  %v191_v8 = vld [vmem:[%s2839_s3] sm:$0xff]  ;;  %2241 = vmatprep.subr.bf16.mxu0 %v2240_v3  ;;  %v80_v11 = vld [vmem:[#allocation2 + $0x8] sm:$0xff]  ;;  %s2468_s3 = smov 120   ;;  %s2473_s29 = smov 80  }
  0x4d   :  { %2260 = vmatprep.subr.bf16.mxu1 %v2240_v3  ;;  %2243 = vmatpush3.bf16.msra.mxu0 %v2240_v3  ;;  %v2248_v10 = vpack.c.bf16 %v192_v9, %v191_v8  ;;  %v83_v13 = vld [vmem:[#allocation5] sm:$0xff]  ;;  %v84_v14 = vld [vmem:[#allocation5 + $0x8] sm:$0xff]  ;;  %s2474_s30 = smov 72   ;;  %s2475_s7 = smov 16  }
  0x4e   :  { %2262 = vmatpush3.bf16.msra.mxu1 %v2240_v3  ;;  %2245 = vmatprep.subr.bf16.mxu0 %v2244_v7  ;;  %s2476_s8 = smov 24   ;;  %s2477_s24 = smov [#allocation10]  }
  0x4f   :  { %2261 = vmatprep.subr.bf16.mxu1 %v2244_v7  ;;  %s1992_s12 = sshll.u32 %s2477_s24, 4  ;;  %s1993_s12 = int_to_ptr.vmem [resolvable:$true] %s1992_s12 }
  0x50   :  { %p2437_p5 = scmp.lt.s32.totalorder %s1993_s12, %s1993_s12 }
  0x51   :  { %2247 = vmatpush3.bf16.msra.mxu0 %v2244_v7 }
  0x52   :  { %2263 = vmatpush3.bf16.msra.mxu1 %v2244_v7 }
  0x53   :  { %2249 = vmatprep.subr.bf16.mxu1 %v2248_v10 }
  0x54   :  { %2134 = vmatmul.mubr.msk.f32.vlgmr.msra.gmra.mrb[0].mxu0 %vm89_vm0, %v80_v11 }
  0x55   :  { %2137 = vmatmul.mubr.msk.f32.vlgmr.msra.gmra.mrb[0].mxu1 %vm89_vm0, %v82_v12 }
  0x56   :  { %2251 = vmatpush3.bf16.msra.mxu1 %v2248_v10  ;;  %2143 = vmatprep.mubr.msk.f32.mxu1 %vm193_vm1, %v83_v13 }
  0x59   :  { %2144 = vmatmul.mubr.msk.f32.vlgmr.msra.gmra.mrb[2].mxu1 %vm193_vm1, %v84_v14 }
 0x127   :  { %v2135_v15 = vpop.f32.mrb[0].mxu0 }
 0x128   :  { %v2138_v16 = vpop.f32.mrb[0].mxu1  ;;  %v188_v17 = vmul.f32 0.35355338, %v2135_v15  ;;  %v168_v18 = vpop.f32.mrb[1].mxu0 }
 0x129   :  { %v178_v19 = vpop.f32.mrb[1].mxu1  ;;  %v187_v20 = vmul.f32 0.35355338, %v168_v18  ;;  %v190_v23 = vmul.f32 0.35355338, %v2138_v16 }
 0x12a   :  { %468 = vrot.lane.b32.xlu1 %v188_v17, %s2468_s3  ;;  %v189_v24 = vmul.f32 0.35355338, %v178_v19 }
 0x12b   :  { %466 = vrot.lane.b32.xlu0 %v187_v20, %s2468_s3  ;;  %2148 = vmatprep.mubr.msk.f32.mxu1 %vm275_vm2, %v187_v20 }
 0x12c   :  { %v2599_v21 = vpop.f32.mrb[2].mxu1 }
 0x12d   :  { %v266_v22 = vpop.f32.mrb[3].mxu1 }
 0x12e   :  { %2146 = vmatprep.subr.msk.mxu1 %vm275_vm2, %v266_v22  ;;  %661 = vrot.lane.b32.xlu1 %v188_v17, %s2469_s25 }
 0x12f   :  { %2147 = vmatpush3.xpose.msk.msra.mxu1 %vm275_vm2, %v266_v22  ;;  %470 = vrot.lane.b32.xlu0 %v266_v22, %s2468_s3 }
 0x132   :  { %2149 = vmatmul.mubr.msk.f32.vlgmr.msra.gmra.mrb[4].mxu1 %vm275_vm2, %v188_v17  ;;  %663 = vrot.lane.b32.xlu1 %v266_v22, %s2469_s25 }
 0x133   :  { %659 = vrot.lane.b32.xlu0 %v187_v20, %s2469_s25 }
 0x136   :  { %852 = vrot.lane.b32.xlu1 %v187_v20, %s2470_s26 }
 0x137   :  { %856 = vrot.lane.b32.xlu0 %v266_v22, %s2470_s26 }
 0x13a   :  { %1270 = vrot.lane.b32.xlu1 %v2599_v21, %s2468_s3 }
 0x13b   :  { %854 = vrot.lane.b32.xlu0 %v188_v17, %s2470_s26 }
 0x13e   :  { %1268 = vrot.lane.b32.xlu1 %v190_v23, %s2468_s3 }
 0x13f   :  { %1266 = vrot.lane.b32.xlu0 %v189_v24, %s2468_s3 }
 0x142   :  { %1459 = vrot.lane.b32.xlu1 %v189_v24, %s2469_s25 }
 0x143   :  { %1463 = vrot.lane.b32.xlu0 %v2599_v21, %s2469_s25 }
 0x146   :  { %1656 = vrot.lane.b32.xlu1 %v2599_v21, %s2470_s26 }
 0x147   :  { %1461 = vrot.lane.b32.xlu0 %v190_v23, %s2469_s25 }
 0x14a   :  { %1654 = vrot.lane.b32.xlu1 %v190_v23, %s2470_s26 }
 0x14b   :  { %1652 = vrot.lane.b32.xlu0 %v189_v24, %s2470_s26 }
 0x14e   :  { %1180 = vrot.lane.b32.xlu1 %v2599_v21, %s2471_s27 }
 0x14f   :  { %573 = vrot.lane.b32.xlu0 %v266_v22, %s2472_s28 }
 0x152   :  { %1373 = vrot.lane.b32.xlu1 %v2599_v21, %s2472_s28 }
 0x156   :  { %380 = vrot.lane.b32.xlu1 %v266_v22, %s2471_s27 }
 0x15a   :  { %766 = vrot.lane.b32.xlu1 %v266_v22, %s2473_s29 }
 0x15e   :  { %959 = vrot.lane.b32.xlu1 %v266_v22, %s2474_s30 }
 0x19c   :  { %v469_v25 = vpop.permute.xlu1 %468 }
 0x19d   :  { %v467_v26 = vpop.permute.xlu0 %466 }
 0x19e   :  { %2158 = vmatprep.mubr.msk.f32.mxu0 %vm275_vm2, %v467_v26 }
 0x1a0   :  { %v662_v27 = vpop.permute.xlu1 %661 }
 0x1a1   :  { %v471_v28 = vpop.permute.xlu0 %470 }
 0x1a2   :  { %2156 = vmatprep.subr.msk.mxu0 %vm275_vm2, %v471_v28 }
 0x1a3   :  { %2157 = vmatpush3.xpose.msk.msra.mxu0 %vm275_vm2, %v471_v28 }
 0x1a4   :  { %v664_v29 = vpop.permute.xlu1 %663 }
 0x1a5   :  { %2166 = vmatprep.subr.msk.mxu0 %vm275_vm2, %v664_v29  ;;  %v660_v30 = vpop.permute.xlu0 %659 }
 0x1a6   :  { %2159 = vmatmul.mubr.msk.f32.vlgmr.msra.gmra.mrb[2].mxu0 %vm275_vm2, %v469_v25 }
 0x1a7   :  { %2167 = vmatpush3.xpose.msk.msra.mxu0 %vm275_vm2, %v664_v29  ;;  %2168 = vmatprep.mubr.msk.f32.mxu0 %vm275_vm2, %v660_v30 }
 0x1a8   :  { %v853_v31 = vpop.permute.xlu1 %852 }
 0x1a9   :  { %v857_v32 = vpop.permute.xlu0 %856 }
 0x1aa   :  { %2169 = vmatmul.mubr.msk.f32.vlgmr.msra.gmra.mrb[4].mxu0 %vm275_vm2, %v662_v27  ;;  %2176 = vmatprep.subr.msk.mxu0 %vm275_vm2, %v857_v32 }
 0x1ab   :  { %2177 = vmatpush3.xpose.msk.msra.mxu0 %vm275_vm2, %v857_v32  ;;  %2178 = vmatprep.mubr.msk.f32.mxu0 %vm275_vm2, %v853_v31 }
 0x1ac   :  { %v1271_v33 = vpop.permute.xlu1 %1270  ;;  %2186 = vmatprep.subr.msk.mxu0 %vm275_vm2, %v2599_v21 }
 0x1ad   :  { %v855_v34 = vpop.permute.xlu0 %854 }
 0x1ae   :  { %2179 = vmatmul.mubr.msk.f32.vlgmr.msra.gmra.mrb[6].mxu0 %vm275_vm2, %v855_v34 }
 0x1af   :  { %2187 = vmatpush3.xpose.msk.msra.mxu0 %vm275_vm2, %v2599_v21  ;;  %2188 = vmatprep.mubr.msk.f32.mxu0 %vm275_vm2, %v189_v24 }
 0x1b0   :  { %v1269_v35 = vpop.permute.xlu1 %1268  ;;  %2196 = vmatprep.subr.msk.mxu0 %vm275_vm2, %v1271_v33 }
 0x1b1   :  { %v1267_v36 = vpop.permute.xlu0 %1266 }
 0x1b2   :  { %2189 = vmatmul.mubr.msk.f32.vlgmr.msra.gmra.mrb[8].mxu0 %vm275_vm2, %v190_v23 }
 0x1b3   :  { %2197 = vmatpush3.xpose.msk.msra.mxu0 %vm275_vm2, %v1271_v33  ;;  %2198 = vmatprep.mubr.msk.f32.mxu0 %vm275_vm2, %v1267_v36 }
 0x1b4   :  { %v1460_v37 = vpop.permute.xlu1 %1459 }
 0x1b5   :  { %v1464_v38 = vpop.permute.xlu0 %1463 }
 0x1b6   :  { %2199 = vmatmul.mubr.msk.f32.vlgmr.msra.gmra.mrb[10].mxu0 %vm275_vm2, %v1269_v35  ;;  %2206 = vmatprep.subr.msk.mxu0 %vm275_vm2, %v1464_v38 }
 0x1b7   :  { %2207 = vmatpush3.xpose.msk.msra.mxu0 %vm275_vm2, %v1464_v38  ;;  %2208 = vmatprep.mubr.msk.f32.mxu0 %vm275_vm2, %v1460_v37 }
 0x1b8   :  { %v1657_v39 = vpop.permute.xlu1 %1656 }
 0x1b9   :  { %2216 = vmatprep.subr.msk.mxu0 %vm275_vm2, %v1657_v39  ;;  %v1462_v40 = vpop.permute.xlu0 %1461 }
 0x1ba   :  { %2209 = vmatmul.mubr.msk.f32.vlgmr.msra.gmra.mrb[12].mxu0 %vm275_vm2, %v1462_v40 }
 0x1bb   :  { %2217 = vmatpush3.xpose.msk.msra.mxu0 %vm275_vm2, %v1657_v39 }
 0x1bc   :  { %v1655_v41 = vpop.permute.xlu1 %1654 }
 0x1bd   :  { %v1653_v42 = vpop.permute.xlu0 %1652 }
 0x1be   :  { %2218 = vmatprep.mubr.msk.f32.mxu0 %vm275_vm2, %v1653_v42 }
 0x1bf   :  { %2219 = vmatmul.mubr.msk.f32.vlgmr.msra.gmra.mrb[14].mxu0 %vm275_vm2, %v1655_v41 }
 0x1c0   :  { %v2642_v43 = vpop.permute.xlu1 %1180 }
 0x1c1   :  { %v2646_v46 = vpop.permute.xlu0 %573 }
 0x1c4   :  { %v2644_v44 = vpop.permute.xlu1 %1373 }
 0x1c8   :  { %v381_v45 = vpop.permute.xlu1 %380 }
 0x1c9   :  { %2151 = vmatprep.subr.mxu1 %v381_v45 }
 0x1ca   :  { %2152 = vmatpush3.msra.mxu1 %v381_v45 }
 0x1cb   :  { %2161 = vmatprep.subr.mxu1 %v2646_v46 }
 0x1cc   :  { %v2678_v2 = vpop.permute.xlu1 %766 }
 0x1d0   :  { %v2694_v10 = vpop.permute.xlu1 %959 }
 0x205   :  { %v2150_v47 = vpop.f32.mrb[4].mxu1 }
 0x206   :  { %v351_v48 = vpop.f32.mrb[5].mxu1  ;;  %v363_v49 = vsel %vm275_vm2, %v2150_v47, -inf }
 0x207   :  { %364 = vmax.xlane.f32.xlu1 %v363_v49  ;;  %v360_v50 = vsel %vm275_vm2, %v351_v48, -inf }
 0x208   :  { %361 = vmax.xlane.f32.xlu0 %v360_v50 }
 0x279   :  { %v2160_v51 = vpop.f32.mrb[2].mxu0 }
 0x27a   :  { %v2651_v52 = vpop.f32.mrb[3].mxu0  ;;  %v556_v53 = vsel %vm275_vm2, %v2160_v51, -inf }
 0x27b   :  { %557 = vmax.xlane.f32.xlu0 %v556_v53  ;;  %v553_v56 = vsel %vm275_vm2, %v2651_v52, -inf }
 0x27d   :  { %v2654_v54 = vpop.f32.mrb[4].mxu0 }
 0x27e   :  { %v2656_v55 = vpop.f32.mrb[5].mxu0  ;;  %v749_v60 = vsel %vm275_vm2, %v2654_v54, -inf }
 0x27f   :  { %554 = vmax.xlane.f32.xlu0 %v553_v56  ;;  %v746_v57 = vsel %vm275_vm2, %v2656_v55, -inf }
 0x280   :  { %747 = vmax.xlane.f32.xlu1 %v746_v57 }
 0x281   :  { %v2662_v58 = vpop.f32.mrb[6].mxu0 }
 0x282   :  { %v2664_v59 = vpop.f32.mrb[7].mxu0  ;;  %v942_v0 = vsel %vm275_vm2, %v2662_v58, -inf }
 0x283   :  { %750 = vmax.xlane.f32.xlu0 %v749_v60  ;;  %v939_v61 = vsel %vm275_vm2, %v2664_v59, -inf }
 0x284   :  { %940 = vmax.xlane.f32.xlu1 %v939_v61 }
 0x285   :  { %v2670_v62 = vpop.f32.mrb[8].mxu0 }
 0x286   :  { %v2672_v63 = vpop.f32.mrb[9].mxu0  ;;  %v1163_v5 = vsel %vm275_vm2, %v2670_v62, -inf }
 0x287   :  { %943 = vmax.xlane.f32.xlu0 %v942_v0  ;;  %v1160_v1 = vsel %vm275_vm2, %v2672_v63, -inf }
 0x288   :  { %1161 = vmax.xlane.f32.xlu1 %v1160_v1 }
 0x289   :  { %v2680_v3 = vpop.f32.mrb[10].mxu0 }
 0x28a   :  { %v2682_v4 = vpop.f32.mrb[11].mxu0  ;;  %v1356_v9 = vsel %vm275_vm2, %v2680_v3, -inf }
 0x28b   :  { %1164 = vmax.xlane.f32.xlu0 %v1163_v5  ;;  %v1353_v6 = vsel %vm275_vm2, %v2682_v4, -inf }
 0x28c   :  { %1354 = vmax.xlane.f32.xlu1 %v1353_v6 }
 0x28d   :  { %v2688_v7 = vpop.f32.mrb[12].mxu0 }
 0x28e   :  { %v2690_v8 = vpop.f32.mrb[13].mxu0  ;;  %v1549_v13 = vsel %vm275_vm2, %v2688_v7, -inf }
 0x28f   :  { %1357 = vmax.xlane.f32.xlu0 %v1356_v9  ;;  %v1546_v11 = vsel %vm275_vm2, %v2690_v8, -inf }
 0x290   :  { %1547 = vmax.xlane.f32.xlu1 %v1546_v11 }
 0x292   :  { %v2698_v12 = vpop.f32.mrb[14].mxu0 }
 0x293   :  { %v2702_v14 = vpop.f32.mrb[15].mxu0  ;;  %1550 = vmax.xlane.f32.xlu0 %v1549_v13  ;;  %v1742_v20 = vsel %vm275_vm2, %v2698_v12, -inf }
 0x294   :  { %v365_v15 = vpop.xlane.xlu1 %364  ;;  %v1739_v23 = vsel %vm275_vm2, %v2702_v14, -inf }
 0x295   :  { %v367_v16 = vsub.f32 %v2150_v47, %v365_v15  ;;  %v362_v17 = vpop.xlane.xlu0 %361 }
 0x296   :  { %v366_v18 = vsub.f32 %v351_v48, %v362_v17 }
 0x297   :  { %v370_v19 = vmul.f32 1.442695, %v367_v16  ;;  %1743 = vmax.xlane.f32.xlu0 %v1742_v20 }
 0x298   :  { %v368_v22 = vmul.f32 1.442695, %v366_v18 }
 0x29a   :  { %2280 = vpow2.f32 %v368_v22 }
 0x29b   :  { %2282 = vpow2.f32 %v370_v19  ;;  %1740 = vmax.xlane.f32.xlu0 %v1739_v23 }
 0x2a1   :  { %1759 = vrot.lane.b32.xlu1 %v2599_v21, %s2474_s30 }
 0x2a4   :  { %v2710_v24 = vpop.eup %2280 }
 0x2a5   :  { %v2712_v25 = vpop.eup %2282  ;;  %2153 = vmatprep.mubr.msk.f32.mxu1 %vm275_vm2, %v2710_v24 }
 0x2a6   :  { %2154 = vmatmul.mubr.msk.f32.vlgmr.msra.gmra.mrb[6].mxu1 %vm275_vm2, %v2712_v25 }
 0x2a7   :  { %2162 = vmatpush3.msra.mxu1 %v2646_v46 }
 0x2a8   :  { %2171 = vmatprep.subr.mxu1 %v2678_v2 }
 0x2b1   :  { %1566 = vrot.lane.b32.xlu0 %v2599_v21, %s2473_s29 }
 0x308   :  { %v558_v26 = vpop.xlane.xlu0 %557 }
 0x309   :  { %v560_v27 = vsub.f32 %v2160_v51, %v558_v26 }
 0x30b   :  { %v563_v28 = vmul.f32 1.442695, %v560_v27 }
 0x30c   :  { %v555_v29 = vpop.xlane.xlu0 %554 }
 0x30d   :  { %2284 = vpow2.f32 %v563_v28  ;;  %v559_v30 = vsub.f32 %v2651_v52, %v555_v29  ;;  %v748_v31 = vpop.xlane.xlu1 %747 }
 0x30e   :  { %v752_v32 = vsub.f32 %v2656_v55, %v748_v31 }
 0x30f   :  { %v561_v33 = vmul.f32 1.442695, %v559_v30 }
 0x310   :  { %v754_v34 = vmul.f32 1.442695, %v752_v32  ;;  %v751_v35 = vpop.xlane.xlu0 %750 }
 0x311   :  { %2286 = vpow2.f32 %v561_v33  ;;  %v753_v36 = vsub.f32 %v2654_v54, %v751_v35  ;;  %v941_v37 = vpop.xlane.xlu1 %940  ;;  %v375_v33 = vsel %vm275_vm2, %v2712_v25, 0.0 }
 0x312   :  { %2288 = vpow2.f32 %v754_v34  ;;  %v945_v21 = vsub.f32 %v2664_v59, %v941_v37 }
 0x313   :  { %v756_v38 = vmul.f32 1.442695, %v753_v36  ;;  %v372_v36 = vsel %vm275_vm2, %v2710_v24, 0.0 }
 0x314   :  { %v947_v39 = vmul.f32 1.442695, %v945_v21  ;;  %v944_v40 = vpop.xlane.xlu0 %943 }
 0x315   :  { %2290 = vpow2.f32 %v756_v38  ;;  %v946_v41 = vsub.f32 %v2662_v58, %v944_v40  ;;  %v1162_v42 = vpop.xlane.xlu1 %1161 }
 0x316   :  { %2292 = vpow2.f32 %v947_v39  ;;  %v1166_v45 = vsub.f32 %v2672_v63, %v1162_v42  ;;  %v1875_v42 = vld [vmem:[#allocation8] sm:$0xff] }
 0x317   :  { %v2285_v46 = vpop.eup %2284  ;;  %v949_v47 = vmul.f32 1.442695, %v946_v41 }
 0x318   :  { %v1168_v48 = vmul.f32 1.442695, %v1166_v45  ;;  %v1165_v49 = vpop.xlane.xlu0 %1164  ;;  %v568_v50 = vsel %vm275_vm2, %v2285_v46, 0.0  ;;  %v1876_v45 = vld [vmem:[#allocation8 + $0x8] sm:$0xff] }
 0x319   :  { %2294 = vpow2.f32 %v949_v47  ;;  %v1167_v51 = vsub.f32 %v2670_v62, %v1165_v49  ;;  %v1355_v52 = vpop.xlane.xlu1 %1354  ;;  %569 = vadd.xlane.f32.xlu1 %v568_v50  ;;  %v2252_v47 = vpack.c.bf16 %v1876_v45, %v1875_v42  ;;  %v1878_v49 = vld [vmem:[#allocation8 + $0x18] sm:$0xff] }
 0x31a   :  { %2296 = vpow2.f32 %v1168_v48  ;;  %v1359_v53 = vsub.f32 %v2682_v4, %v1355_v52  ;;  %v1877_v48 = vld [vmem:[#allocation8 + $0x10] sm:$0xff] }
 0x31b   :  { %v2287_v54 = vpop.eup %2286  ;;  %v1170_v55 = vmul.f32 1.442695, %v1167_v51  ;;  %2253 = vmatprep.subr.bf16.mxu0 %v2252_v47  ;;  %v2256_v50 = vpack.c.bf16 %v1878_v49, %v1877_v48 }
 0x31c   :  { %v2289_v56 = vpop.eup %2288  ;;  %v1361_v57 = vmul.f32 1.442695, %v1359_v53  ;;  %2163 = vmatprep.mubr.msk.f32.mxu1 %vm275_vm2, %v2287_v54  ;;  %v1358_v58 = vpop.xlane.xlu0 %1357  ;;  %v565_v59 = vsel %vm275_vm2, %v2287_v54, 0.0  ;;  %2255 = vmatpush3.bf16.msra.mxu0 %v2252_v47 }
 0x31d   :  { %2298 = vpow2.f32 %v1170_v55  ;;  %v1360_v60 = vsub.f32 %v2680_v3, %v1358_v58  ;;  %v1548_v61 = vpop.xlane.xlu1 %1547  ;;  %2164 = vmatmul.mubr.msk.f32.vlgmr.msra.gmra.mrb[8].mxu1 %vm275_vm2, %v2285_v46  ;;  %566 = vadd.xlane.f32.xlu0 %v565_v59  ;;  %v758_v15 = vsel %vm275_vm2, %v2289_v56, 0.0 }
 0x31e   :  { %2300 = vpow2.f32 %v1361_v57  ;;  %v1552_v62 = vsub.f32 %v2690_v8, %v1548_v61  ;;  %2172 = vmatpush3.msra.mxu1 %v2678_v2  ;;  %2173 = vmatprep.mubr.msk.f32.mxu1 %vm275_vm2, %v2289_v56 }
 0x31f   :  { %v2291_v63 = vpop.eup %2290  ;;  %v1363_v0 = vmul.f32 1.442695, %v1360_v60  ;;  %2181 = vmatprep.subr.mxu1 %v2694_v10  ;;  %2257 = vmatprep.subr.bf16.mxu0 %v2256_v50 }
 0x320   :  { %v2293_v1 = vpop.eup %2292  ;;  %v1554_v4 = vmul.f32 1.442695, %v1552_v62  ;;  %v1551_v5 = vpop.xlane.xlu0 %1550  ;;  %v761_v3 = vsel %vm275_vm2, %v2291_v63, 0.0  ;;  %2259 = vmatpush3.bf16.msra.mxu0 %v2256_v50 }
 0x321   :  { %2302 = vpow2.f32 %v1363_v0  ;;  %v1553_v6 = vsub.f32 %v2688_v7, %v1551_v5  ;;  %2174 = vmatmul.mubr.msk.f32.vlgmr.msra.gmra.mrb[10].mxu1 %vm275_vm2, %v2291_v63  ;;  %762 = vadd.xlane.f32.xlu0 %v761_v3  ;;  %v951_v8 = vsel %vm275_vm2, %v2293_v1, 0.0  ;;  %v1760_v29 = vpop.permute.xlu1 %1759 }
 0x322   :  { %2304 = vpow2.f32 %v1554_v4  ;;  %2182 = vmatpush3.msra.mxu1 %v2694_v10  ;;  %952 = vadd.xlane.f32.xlu1 %v951_v8 }
 0x323   :  { %v2295_v2 = vpop.eup %2294  ;;  %v1556_v9 = vmul.f32 1.442695, %v1553_v6  ;;  %2183 = vmatprep.mubr.msk.f32.mxu1 %vm275_vm2, %v2293_v1  ;;  %2191 = vmatprep.subr.mxu1 %v2642_v43 }
 0x324   :  { %v2297_v11 = vpop.eup %2296  ;;  %v1744_v13 = vpop.xlane.xlu0 %1743  ;;  %v954_v19 = vsel %vm275_vm2, %v2295_v2, 0.0 }
 0x325   :  { %2306 = vpow2.f32 %v1556_v9  ;;  %v1746_v7 = vsub.f32 %v2698_v12, %v1744_v13  ;;  %759 = vadd.xlane.f32.xlu0 %v758_v15  ;;  %2184 = vmatmul.mubr.msk.f32.vlgmr.msra.gmra.mrb[12].mxu1 %vm275_vm2, %v2295_v2  ;;  %v1172_v37 = vsel %vm275_vm2, %v2297_v11, 0.0 }
 0x326   :  { %2192 = vmatpush3.msra.mxu1 %v2642_v43  ;;  %2193 = vmatprep.mubr.msk.f32.mxu1 %vm275_vm2, %v2297_v11 }
 0x327   :  { %v2299_v10 = vpop.eup %2298  ;;  %v1749_v16 = vmul.f32 1.442695, %v1746_v7  ;;  %2201 = vmatprep.subr.mxu1 %v2644_v44 }
 0x328   :  { %v2301_v17 = vpop.eup %2300  ;;  %v1741_v18 = vpop.xlane.xlu0 %1740  ;;  %v1175_v35 = vsel %vm275_vm2, %v2299_v10, 0.0 }
 0x329   :  { %2308 = vpow2.f32 %v1749_v16  ;;  %v1745_v20 = vsub.f32 %v2702_v14, %v1741_v18  ;;  %955 = vadd.xlane.f32.xlu0 %v954_v19  ;;  %2194 = vmatmul.mubr.msk.f32.vlgmr.msra.gmra.mrb[14].mxu1 %vm275_vm2, %v2299_v10  ;;  %v1365_v12 = vsel %vm275_vm2, %v2301_v17, 0.0 }
 0x32a   :  { %2202 = vmatpush3.msra.mxu1 %v2644_v44  ;;  %1366 = vadd.xlane.f32.xlu1 %v1365_v12 }
 0x32b   :  { %v2303_v43 = vpop.eup %2302  ;;  %v1747_v22 = vmul.f32 1.442695, %v1745_v20  ;;  %2203 = vmatprep.mubr.msk.f32.mxu1 %vm275_vm2, %v2301_v17 }
 0x32c   :  { %v2305_v23 = vpop.eup %2304  ;;  %v1567_v26 = vpop.permute.xlu0 %1566  ;;  %v1368_v27 = vsel %vm275_vm2, %v2303_v43, 0.0 }
 0x32d   :  { %2310 = vpow2.f32 %v1747_v22  ;;  %2204 = vmatmul.mubr.msk.f32.vlgmr.msra.gmra.mrb[16].mxu1 %vm275_vm2, %v2303_v43  ;;  %1369 = vadd.xlane.f32.xlu0 %v1368_v27  ;;  %v1558_v14 = vsel %vm275_vm2, %v2305_v23, 0.0 }
 0x32e   :  { %2211 = vmatprep.subr.mxu1 %v1567_v26  ;;  %1559 = vadd.xlane.f32.xlu1 %v1558_v14 }
 0x32f   :  { %v2307_v28 = vpop.eup %2306  ;;  %2212 = vmatpush3.msra.mxu1 %v1567_v26  ;;  %2213 = vmatprep.mubr.msk.f32.mxu1 %vm275_vm2, %v2305_v23 }
 0x330   :  { %2221 = vmatprep.subr.mxu1 %v1760_v29  ;;  %v1561_v44 = vsel %vm275_vm2, %v2307_v28, 0.0 }
 0x331   :  { %1562 = vadd.xlane.f32.xlu0 %v1561_v44  ;;  %2214 = vmatmul.mubr.msk.f32.vlgmr.msra.gmra.mrb[18].mxu1 %vm275_vm2, %v2307_v28 }
 0x332   :  { %2222 = vmatpush3.msra.mxu1 %v1760_v29 }
 0x333   :  { %v2309_v30 = vpop.eup %2308 }
 0x334   :  { %v1754_v31 = vsel %vm275_vm2, %v2309_v30, 0.0 }
 0x335   :  { %1755 = vadd.xlane.f32.xlu0 %v1754_v31 }
 0x337   :  { %v2311_v32 = vpop.eup %2310 }
 0x338   :  { %2223 = vmatprep.mubr.msk.f32.mxu1 %vm275_vm2, %v2311_v32  ;;  %v1751_v34 = vsel %vm275_vm2, %v2311_v32, 0.0 }
 0x339   :  { %376 = vadd.xlane.f32.xlu0 %v375_v33  ;;  %1752 = vadd.xlane.f32.xlu1 %v1751_v34 }
 0x33a   :  { %2224 = vmatmul.mubr.msk.f32.vlgmr.msra.gmra.mrb[20].mxu1 %vm275_vm2, %v2309_v30 }
 0x33d   :  { %1176 = vadd.xlane.f32.xlu0 %v1175_v35  ;;  %373 = vadd.xlane.f32.xlu1 %v372_v36 }
 0x341   :  { %1173 = vadd.xlane.f32.xlu1 %v1172_v37 }
 0x379   :  { %v2774_v21 = vpop.f32.mrb[6].mxu1 }
 0x37a   :  { %v2776_v38 = vpop.f32.mrb[7].mxu1 }
 0x3a6   :  { %v570_v40 = vpop.xlane.xlu1 %569 }
 0x3a7   :  { %2312 = vrcp.f32 %v570_v40 }
 0x3aa   :  { %v567_v25 = vpop.xlane.xlu0 %566 }
 0x3ab   :  { %2314 = vrcp.f32 %v567_v25 }
 0x3ae   :  { %v763_v39 = vpop.xlane.xlu0 %762 }
 0x3af   :  { %2316 = vrcp.f32 %v763_v39  ;;  %v953_v46 = vpop.xlane.xlu1 %952 }
 0x3b0   :  { %2318 = vrcp.f32 %v953_v46 }
 0x3b1   :  { %v2313_v51 = vpop.eup %2312 }
 0x3b2   :  { %v760_v41 = vpop.xlane.xlu0 %759 }
 0x3b3   :  { %2320 = vrcp.f32 %v760_v41 }
 0x3b5   :  { %v2315_v53 = vpop.eup %2314 }
 0x3b6   :  { %v956_v24 = vpop.xlane.xlu0 %955 }
 0x3b7   :  { %v1367_v57 = vpop.xlane.xlu1 %1366  ;;  %2322 = vrcp.f32 %v956_v24 }
 0x3b9   :  { %v2317_v59 = vpop.eup %2316 }
 0x3ba   :  { %v1370_v54 = vpop.xlane.xlu0 %1369  ;;  %v2319_v0 = vpop.eup %2318 }
 0x3bb   :  { %2324 = vrcp.f32 %v1370_v54  ;;  %v1560_v1 = vpop.xlane.xlu1 %1559 }
 0x3bc   :  { %2326 = vrcp.f32 %v1367_v57 }
 0x3bd   :  { %v2321_v5 = vpop.eup %2320 }
 0x3be   :  { %v1563_v63 = vpop.xlane.xlu0 %1562 }
 0x3bf   :  { %2328 = vrcp.f32 %v1563_v63 }
 0x3c0   :  { %2330 = vrcp.f32 %v1560_v1 }
 0x3c1   :  { %v2323_v9 = vpop.eup %2322 }
 0x3c2   :  { %v1756_v7 = vpop.xlane.xlu0 %1755 }
 0x3c3   :  { %2332 = vrcp.f32 %v1756_v7 }
 0x3c5   :  { %v2325_v15 = vpop.eup %2324 }
 0x3c6   :  { %v2327_v16 = vpop.eup %2326  ;;  %v1753_v17 = vpop.xlane.xlu1 %1752 }
 0x3c7   :  { %2334 = vrcp.f32 %v1753_v17  ;;  %v377_v33 = vpop.xlane.xlu0 %376 }
 0x3c9   :  { %v2329_v12 = vpop.eup %2328 }
 0x3ca   :  { %v2331_v22 = vpop.eup %2330  ;;  %v374_v32 = vpop.xlane.xlu1 %373 }
 0x3cb   :  { %2336 = vrcp.f32 %v374_v32  ;;  %v1177_v35 = vpop.xlane.xlu0 %1176 }
 0x3cc   :  { %2338 = vrcp.f32 %v377_v33 }
 0x3cd   :  { %v2333_v14 = vpop.eup %2332 }
 0x3ce   :  { %v1174_v34 = vpop.xlane.xlu1 %1173 }
 0x3cf   :  { %2340 = vrcp.f32 %v1174_v34 }
 0x3d0   :  { %2342 = vrcp.f32 %v1177_v35 }
 0x3d1   :  { %v2335_v29 = vpop.eup %2334 }
 0x3d5   :  { %v2337_v37 = vpop.eup %2336 }
 0x3d6   :  { %v2339_v40 = vpop.eup %2338  ;;  %v464_v41 = vmul.f32 %v2337_v37, %v2776_v38 }
 0x3d7   :  { %v465_v24 = vmul.f32 %v2339_v40, %v2774_v21 }
 0x3d9   :  { %v2341_v54 = vpop.eup %2340 }
 0x3f0   :  { %v2165_v52 = vpop.f32.mrb[8].mxu1 }
 0x3f1   :  { %v658_v55 = vmul.f32 %v2313_v51, %v2165_v52  ;;  %v648_v56 = vpop.f32.mrb[9].mxu1 }
 0x3f2   :  { %v657_v58 = vmul.f32 %v2315_v53, %v648_v56  ;;  %v2343_v56 = vpop.eup %2342 }
 0x3f3   :  { %1049 = vrot.lane.b32.xlu0 %v658_v55, %s2465_s10 }
 0x3f4   :  { %v2175_v60 = vpop.f32.mrb[10].mxu1  ;;  %1047 = vrot.lane.b32.xlu1 %v657_v58, %s2465_s10 }
 0x3f5   :  { %v851_v61 = vmul.f32 %v2317_v59, %v2175_v60  ;;  %v841_v62 = vpop.f32.mrb[11].mxu1 }
 0x3f6   :  { %v850_v6 = vmul.f32 %v2321_v5, %v841_v62  ;;  %v2052_v5 = vld [vmem:[%s2841_s5] ss:$0 sm:$0xff]  ;;  %s2432_s5 = scalar_lea.vmem %s1993_s12, 512 }
 0x3f7   :  { %p2433_p4 = scmp.ne.s32.totalorder %s1993_s12, %s2432_s5  ;;  %p2438_p6 = scmp.lt.s32.totalorder %s2432_s5, %s2432_s5 }
 0x3f8   :  { %v2185_v4 = vpop.f32.mrb[12].mxu1  ;;  %1057 = vrot.lane.b32.xlu1 %v851_v61, %s2475_s7 }
 0x3f9   :  { %v1034_v3 = vpop.f32.mrb[13].mxu1  ;;  %v1044_v13 = vmul.f32 %v2323_v9, %v2185_v4  ;;  %p2439_p7 = por %p2438_p6, %p2437_p5 }
 0x3fa   :  { %v1043_v8 = vmul.f32 %v2319_v0, %v1034_v3 }
 0x3fb   :  { %p2440_p8 = pnand %p2439_p7, %p2433_p4 }
 0x3fc   :  { %v2781_v2 = vpop.f32.mrb[14].mxu1  ;;  %1063 = vrot.lane.b32.xlu0 %v1043_v8, %s2476_s8  ;;  %1055 = vrot.lane.b32.xlu1 %v850_v6, %s2475_s7 }
 0x3fd   :  { %v2785_v11 = vpop.f32.mrb[15].mxu1  ;;  %v1265_v58 = vmul.f32 %v2343_v56, %v2781_v2 }
 0x3fe   :  { %v1264_v57 = vmul.f32 %v2341_v54, %v2785_v11 }
 0x400   :  { %v2205_v10 = vpop.f32.mrb[16].mxu1  ;;  %1065 = vrot.lane.b32.xlu1 %v1044_v13, %s2476_s8 }
 0x401   :  { %v1458_v18 = vmul.f32 %v2325_v15, %v2205_v10  ;;  %v1448_v19 = vpop.f32.mrb[17].mxu1 }
 0x402   :  { %v1457_v20 = vmul.f32 %v2327_v16, %v1448_v19 }
 0x404   :  { %1847 = vrot.lane.b32.xlu0 %v1457_v20, %s2465_s10  ;;  %v2215_v43 = vpop.f32.mrb[18].mxu1  ;;  %1849 = vrot.lane.b32.xlu1 %v1458_v18, %s2465_s10 }
 0x405   :  { %v1651_v23 = vmul.f32 %v2329_v12, %v2215_v43  ;;  %v1641_v26 = vpop.f32.mrb[19].mxu1 }
 0x406   :  { %v1650_v27 = vmul.f32 %v2331_v22, %v1641_v26 }
 0x408   :  { %1855 = vrot.lane.b32.xlu0 %v1650_v27, %s2475_s7  ;;  %1857 = vrot.lane.b32.xlu1 %v1651_v23, %s2475_s7 }
 0x40d   :  { %v2225_v28 = vpop.f32.mrb[20].mxu1 }
 0x40e   :  { %v1844_v44 = vmul.f32 %v2333_v14, %v2225_v28  ;;  %v1834_v30 = vpop.f32.mrb[21].mxu1 }
 0x40f   :  { %v1843_v31 = vmul.f32 %v2335_v29, %v1834_v30 }
 0x410   :  { %1865 = vrot.lane.b32.xlu1 %v1844_v44, %s2476_s8 }
 0x411   :  { %1863 = vrot.lane.b32.xlu0 %v1843_v31, %s2476_s8 }
 0x465   :  { %v1050_v25 = vpop.permute.xlu0 %1049 }
 0x466   :  { %v1048_v36 = vpop.permute.xlu1 %1047  ;;  %v1070_v49 = vsel %vm275_vm2, %v465_v24, %v1050_v25 }
 0x467   :  { %v1069_v42 = vsel %vm275_vm2, %v464_v41, %v1048_v36 }
 0x46a   :  { %v1058_v39 = vpop.permute.xlu1 %1057 }
 0x46b   :  { %v1072_v50 = vsel %vm193_vm1, %v1070_v49, %v1058_v39 }
 0x46e   :  { %v1056_v45 = vpop.permute.xlu1 %1055  ;;  %v1064_v46 = vpop.permute.xlu0 %1063 }
 0x46f   :  { %v1071_v47 = vsel %vm193_vm1, %v1069_v42, %v1056_v45 }
 0x470   :  { %v1074_v48 = vsel %vm1073_vm3, %v1071_v47, %v1064_v46 }
 0x471   :  { %2234 = vmatprep.mubr.msk.f32.mxu0 %vm89_vm0, %v1074_v48 }
 0x472   :  { %v1066_v51 = vpop.permute.xlu1 %1065 }
 0x473   :  { %v1075_v38 = vsel %vm1073_vm3, %v1072_v50, %v1066_v51 }
 0x474   :  { %2235 = vmatmul.mubr.msk.f32.vlgmr.msra.gmra.mrb[16].mxu0 %vm89_vm0, %v1075_v38 }
 0x476   :  { %v1850_v52 = vpop.permute.xlu1 %1849  ;;  %v1848_v53 = vpop.permute.xlu0 %1847 }
 0x477   :  { %v1869_v59 = vsel %vm275_vm2, %v1264_v57, %v1848_v53  ;;  %v1870_v61 = vsel %vm275_vm2, %v1265_v58, %v1850_v52 }
 0x47a   :  { %v1858_v21 = vpop.permute.xlu1 %1857  ;;  %v1856_v55 = vpop.permute.xlu0 %1855 }
 0x47b   :  { %v1871_v62 = vsel %vm193_vm1, %v1869_v59, %v1856_v55  ;;  %v1872_v0 = vsel %vm193_vm1, %v1870_v61, %v1858_v21 }
 0x482   :  { %v1866_v60 = vpop.permute.xlu1 %1865 }
 0x483   :  { %v1864_v63 = vpop.permute.xlu0 %1863  ;;  %v1874_v4 = vsel %vm1073_vm3, %v1872_v0, %v1866_v60 }
 0x484   :  { %v1873_v1 = vsel %vm1073_vm3, %v1871_v62, %v1864_v63 }
 0x485   :  { %2237 = vmatprep.mubr.msk.f32.mxu0 %vm89_vm0, %v1873_v1 }
 0x486   :  { %2238 = vmatmul.mubr.msk.f32.gmra.mrb[18].mxu0 %vm89_vm0, %v1874_v4 }
 0x547   :  { %v2236_v3 = vpop.f32.mrb[16].mxu0 }
 0x548   :  { %v1970_v6 = vadd.f32 %v2236_v3, %v2052_v5  ;;  %v1964_v8 = vpop.f32.mrb[17].mxu0 }
 0x549   :  { %v1965_v2 = vadd.f32 %v2052_v5, %v1964_v8 }
 0x54a   :  { %1984 = vst.msk [vmem:[#allocation10 + $0x8] sm:$0xff] %vm89_vm0, %v1970_v6 }
 0x54b   :  { %1983 = vst.msk [vmem:[#allocation10] sm:$0xff] %vm89_vm0, %v1965_v2 }
 0x559   :  { %v2239_v9 = vpop.f32.mrb[18].mxu0 }
 0x55a   :  { %v1980_v11 = vadd.f32 %v2239_v9, %v2052_v5  ;;  %v1974_v13 = vpop.f32.mrb[19].mxu0 }
 0x55b   :  { %v1975_v15 = vadd.f32 %v2052_v5, %v1974_v13 }
 0x55c   :  { %1986 = vst.msk [vmem:[#allocation10 + $0x18] sm:$0xff] %vm89_vm0, %v1980_v11 }
 0x55d   :  { %1985 = vst.msk [vmem:[#allocation10 + $0x10] sm:$0xff] %vm89_vm0, %v1975_v15 }
 0x55e   :  { %2443 = shalt.err (!%p2440_p8)
}
 0x55f   :  { %s2444_s15 = scalar_lea.hbm %s2842_s6, 512 }
 0x560   :  { %p2445_p9 = scmp.ne.s32.totalorder %s2842_s6, %s2444_s15  ;;  %p2448_p10 = scmp.lt.u32.totalorder %s2444_s15, %s2842_s6 }
 0x562   :  { %p2450_p11 = pnand %p2448_p10, %p2445_p9 }
 0x564   :  { %2453 = shalt.err (!%p2450_p11)
}
 0x565   :  { %1998 = dma.vmem_to_hbm [thread:$0]  %s1993_s12, 512, %s2842_s6, [#allocation4], %s2464_s9, %s2464_s9, %s2465_s10  }
 0x566   :  { %2460 = dma.done.wait [#allocation4], 512  }
 0x567   :  { %2461 = vsyncadd [#allocation4], 4294966784 }
 0x568   :  { %2002 = vsyncpa [#allocation3], 1 }
 0x569   :  { %2003 = vsyncpa [#allocation6], 1 }
 0x56a   :  { %2004 = vsyncpa [#allocation9], 1 }
 0x56b   :  { %2005 = vsyncpa [#allocation4], 1 }

</bundles_post_ra>
